<compile_context>
chip_gen: v6e
topology: v6e:2x2x1
jax: 0.10.0
libtpu: 0.0.40
codegen_flags: <defaults>
</compile_context>

<pallas_src>
import math
import functools

import jax
import jax.numpy as jnp
from jax import lax
from jax.experimental import pallas as pl
from jax.experimental.pallas import tpu as pltpu


def _r(x: int, m: int) -> int:
    return ((x + m - 1) // m) * m


def gaussian_taps_1d(kernel_size: int, sigma: float):
    """Normalized 1-D taps; outer(taps, taps) equals the module's 2-D kernel."""
    mean = (kernel_size - 1) / 2.0
    g = [math.exp(-(((i - mean) / sigma) ** 2) / 2.0) for i in range(kernel_size)]
    s = sum(g)
    return tuple(v / s for v in g)


def make_gaussian_kernel_2d(kernel_size: int, sigma: float) -> jnp.ndarray:
    """Exact reproduction of GaussianSmoothing.__init__ (dim=2), for the reference."""
    coords = jnp.arange(kernel_size, dtype=jnp.float32)
    mean = (kernel_size - 1) / 2.0
    g1d = (1.0 / (sigma * math.sqrt(2 * math.pi))) * jnp.exp(
        -(((coords - mean) / sigma) ** 2) / 2.0
    )
    k2d = g1d[:, None] * g1d[None, :]
    return k2d / jnp.sum(k2d)


def _gauss_sep_kernel(x_ref, o_ref, h_ref, *, taps, Ho: int, Wo: int):
    # x_ref: VMEM (B, Hs, W)   raw input block (no padding anywhere)
    # h_ref: VMEM (B, Hs, Wo)  horizontal-pass scratch
    # o_ref: VMEM (B, Hos, Wo) output block (exact output width)
    K = len(taps)

    # Pass 1: horizontal (lane axis) 1-D gaussian.  Each tap shift is a
    # ref-sliced load so the lane offset rides the load path; max slice end is
    # (K-1)+Wo == W, always in bounds.  astype is a no-op for f32 inputs.
    h = x_ref[:, :, 0:Wo].astype(jnp.float32) * taps[0]
    for kj in range(1, K):
        h = h + x_ref[:, :, kj:kj + Wo].astype(jnp.float32) * taps[kj]
    h_ref[...] = h.astype(h_ref.dtype)

    # Pass 2: vertical (sublane axis) 1-D gaussian, f32 accumulation,
    # single final cast to the output dtype.
    acc = h_ref[:, 0:Ho, :].astype(jnp.float32) * taps[0]
    for ki in range(1, K):
        acc = acc + h_ref[:, ki:ki + Ho, :].astype(jnp.float32) * taps[ki]
    o_ref[...] = acc.astype(o_ref.dtype)


def _tpu_vmem_capacity_bytes() -> int:
    """Physical VMEM per core; conservative 64 MiB (v7x) if the query fails."""
    cap = 64 << 20
    try:
        info = pltpu.get_tpu_info()
        cap = int(getattr(info, "vmem_capacity_bytes", cap) or cap)
    except Exception:
        pass
    return cap


def _per_image_block_bytes(h_in: int, K: int, W: int, Wo: int,
                           in_itemsize: int, scr_itemsize: int) -> int:
    """VMEM bytes one image contributes per grid step: double-buffered input and
    output blocks plus the single-buffered scratch, padded to (8, 128) tiling."""
    h_out = h_in - K + 1
    in_b = _r(h_in, 8) * _r(W, 128) * in_itemsize
    scr_b = _r(h_in, 8) * _r(Wo, 128) * scr_itemsize
    out_b = _r(h_out, 8) * _r(Wo, 128) * in_itemsize
    return 2 * in_b + 2 * out_b + scr_b


# Keep at least this many grid steps so v7x's 2 TensorCores both get work and
# the DMA double-buffers actually overlap with compute.
_MIN_GRID_STEPS = 4


def _run_strip(x2d: jnp.ndarray, taps, scr_dtype, budget: int, cap: int) -> jnp.ndarray:
    """One pallas_call over the full (strip) height of x2d: (NC, Hs, W) -> (NC, Hos, Wo)."""
    NC, Hs, W = x2d.shape
    K = len(taps)
    Hos, Wo = Hs - K + 1, W - K + 1
    itemsize = x2d.dtype.itemsize
    per_image = _per_image_block_bytes(Hs, K, W, Wo, itemsize, jnp.dtype(scr_dtype).itemsize)

    bt_vmem = max(1, budget // max(per_image, 1))
    bt_steps = max(1, -(-NC // _MIN_GRID_STEPS))          # ceil(NC / min_steps)
    B_tile = int(max(1, min(NC, bt_vmem, bt_steps)))

    usage = B_tile * per_image
    vmem_limit = int(min(cap, max(3 * usage + (8 << 20), 32 << 20)))

    kernel = functools.partial(_gauss_sep_kernel, taps=taps, Ho=Hos, Wo=Wo)
    return pl.pallas_call(
        kernel,
        out_shape=jax.ShapeDtypeStruct((NC, Hos, Wo), x2d.dtype),
        grid=(pl.cdiv(NC, B_tile),),
        in_specs=[pl.BlockSpec((B_tile, Hs, W), lambda b: (b, 0, 0))],
        out_specs=pl.BlockSpec((B_tile, Hos, Wo), lambda b: (b, 0, 0)),
        scratch_shapes=[pltpu.VMEM((B_tile, Hs, Wo), scr_dtype)],
        compiler_params=pltpu.CompilerParams(
            dimension_semantics=("parallel",),
            vmem_limit_bytes=vmem_limit,
        ),
    )(x2d)


@functools.partial(jax.jit, static_argnums=(1, 2))
def gaussian_smoothing(x: jnp.ndarray, kernel_size: int, sigma: float) -> jnp.ndarray:
    """Depthwise 'valid' gaussian conv2d on NCHW input (GaussianSmoothing, dim=2)."""
    N, C, H, W = x.shape
    K = int(kernel_size)
    Ho, Wo = H - K + 1, W - K + 1
    assert Ho > 0 and Wo > 0, "kernel larger than input"
    taps = gaussian_taps_1d(K, float(sigma))

    # f32 scratch for f32 inputs; input dtype otherwise (relieves v5e's single
    # vector-store slot; adds one intermediate rounding, accumulation stays f32).
    scr_dtype = jnp.float32 if x.dtype == jnp.float32 else x.dtype

    cap = _tpu_vmem_capacity_bytes()
    budget = max(8 << 20, min(32 << 20, cap // 5))   # per-step block budget

    NC = N * C
    x2d = x.reshape(NC, H, W)
    itemsize = x.dtype.itemsize
    scr_itemsize = jnp.dtype(scr_dtype).itemsize

    if _per_image_block_bytes(H, K, W, Wo, itemsize, scr_itemsize) <= budget:
        out = _run_strip(x2d, taps, scr_dtype, budget, cap)
    else:
        # H-strip fallback for very large images (keeps blocks in the sweet
        # spot on all generations, incl. v7x's 64 MiB VMEM).  Each strip
        # re-reads a (K-1)-row halo.
        # TODO(synk): an in-kernel halo'd H grid axis (element-offset row
        # windows or a manual strip DMA) would avoid the wrapper-side strip
        # slice copies for this regime.
        rows_out = 8
        while (rows_out + 8 <= Ho and
               _per_image_block_bytes(rows_out + 8 + K - 1, K, W, Wo,
                                      itemsize, scr_itemsize) <= budget):
            rows_out += 8
        pieces = []
        r0 = 0
        while r0 < Ho:
            ro = min(rows_out, Ho - r0)
            xs = x2d[:, r0:r0 + ro + K - 1, :]
            pieces.append(_run_strip(xs, taps, scr_dtype, budget, cap))
            r0 += ro
        out = jnp.concatenate(pieces, axis=1)

    return out.reshape(N, C, Ho, Wo)


def reference_depthwise_conv(x, kernel_size, sigma):
    """lax reference: depthwise valid conv with the exact PyTorch 2-D kernel."""
    C = x.shape[1]
    k2d = make_gaussian_kernel_2d(kernel_size, sigma)
    w = jnp.broadcast_to(k2d, (C, 1, kernel_size, kernel_size))
    return lax.conv_general_dilated(
        x, w,
        window_strides=(1, 1),
        padding="VALID",
        dimension_numbers=("NCHW", "OIHW", "NCHW"),
        feature_group_count=C,
    )


if __name__ == "__main__":
    # GaussianSmoothing(channels=4, kernel_size=3, sigma=1.0, dim=2)
    N, C, H, W = 2, 4, 16, 16
    K, SIGMA = 3, 1.0

    key = jax.random.PRNGKey(0)
    x = jax.random.normal(key, (N, C, H, W), dtype=jnp.float32)

    out = jax.block_until_ready(gaussian_smoothing(x, K, SIGMA))
    ref = reference_depthwise_conv(x, K, SIGMA)

    assert out.shape == (N, C, H - K + 1, W - K + 1)
    assert jnp.allclose(out, ref, atol=1e-5, rtol=1e-5), float(
        jnp.max(jnp.abs(out - ref))
    )

    print("KERNEL_OK")
</pallas_src>

<mosaic_0001>
module attributes {stable_mosaic.version = 11 : i64} {
  func.func @_gauss_sep_kernel(%arg0: i32, %arg1: memref<2x16x16xf32, #tpu.memory_space<vmem>>, %arg2: memref<2x14x14xf32, #tpu.memory_space<vmem>>, %arg3: memref<2x16x14xf32, #tpu.memory_space<vmem>>) attributes {dimension_semantics = [#tpu.dimension_semantics<parallel>], iteration_bounds = array<i64: 4>, scalar_prefetch = 0 : i64, scratch_operands = 1 : i64, tpu.core_type = #tpu.core_type<tc>, window_params = [{transform_indices = @transform_0, window_bounds = array<i64: 2, 16, 16>}, {transform_indices = @transform_1, window_bounds = array<i64: 2, 14, 14>}]} {
    %c0 = arith.constant 0 : index
    %c0_0 = arith.constant 0 : index
    %c0_1 = arith.constant 0 : index
    %0 = vector.load %arg1[%c0, %c0_0, %c0_1] : memref<2x16x16xf32, #tpu.memory_space<vmem>>, vector<2x16x14xf32>
    %cst = arith.constant 0.274068624 : f32
    %1 = vector.broadcast %cst : f32 to vector<2x16x14xf32>
    %2 = arith.mulf %0, %1 : vector<2x16x14xf32>
    %c0_2 = arith.constant 0 : index
    %c0_3 = arith.constant 0 : index
    %c1 = arith.constant 1 : index
    %3 = vector.load %arg1[%c0_2, %c0_3, %c1] : memref<2x16x16xf32, #tpu.memory_space<vmem>>, vector<2x16x14xf32>
    %cst_4 = arith.constant 0.451862752 : f32
    %4 = vector.broadcast %cst_4 : f32 to vector<2x16x14xf32>
    %5 = arith.mulf %3, %4 : vector<2x16x14xf32>
    %6 = arith.addf %2, %5 : vector<2x16x14xf32>
    %c0_5 = arith.constant 0 : index
    %c0_6 = arith.constant 0 : index
    %c2 = arith.constant 2 : index
    %7 = vector.load %arg1[%c0_5, %c0_6, %c2] : memref<2x16x16xf32, #tpu.memory_space<vmem>>, vector<2x16x14xf32>
    %cst_7 = arith.constant 0.274068624 : f32
    %8 = vector.broadcast %cst_7 : f32 to vector<2x16x14xf32>
    %9 = arith.mulf %7, %8 : vector<2x16x14xf32>
    %10 = arith.addf %6, %9 : vector<2x16x14xf32>
    %c0_8 = arith.constant 0 : index
    %c0_9 = arith.constant 0 : index
    %c0_10 = arith.constant 0 : index
    %11 = vector.load %arg3[%c0_8, %c0_9, %c0_10] : memref<2x16x14xf32, #tpu.memory_space<vmem>>, vector<2x16x14xf32>
    tpu.vector_store %arg3[%c0_8, %c0_9, %c0_10], %10 {strides = array<i32>} : memref<2x16x14xf32, #tpu.memory_space<vmem>>, vector<2x16x14xf32>,
    %c0_11 = arith.constant 0 : index
    %c0_12 = arith.constant 0 : index
    %c0_13 = arith.constant 0 : index
    %12 = vector.load %arg3[%c0_11, %c0_12, %c0_13] : memref<2x16x14xf32, #tpu.memory_space<vmem>>, vector<2x14x14xf32>
    %cst_14 = arith.constant 0.274068624 : f32
    %13 = vector.broadcast %cst_14 : f32 to vector<2x14x14xf32>
    %14 = arith.mulf %12, %13 : vector<2x14x14xf32>
    %c0_15 = arith.constant 0 : index
    %c1_16 = arith.constant 1 : index
    %c0_17 = arith.constant 0 : index
    %15 = vector.load %arg3[%c0_15, %c1_16, %c0_17] : memref<2x16x14xf32, #tpu.memory_space<vmem>>, vector<2x14x14xf32>
    %cst_18 = arith.constant 0.451862752 : f32
    %16 = vector.broadcast %cst_18 : f32 to vector<2x14x14xf32>
    %17 = arith.mulf %15, %16 : vector<2x14x14xf32>
    %18 = arith.addf %14, %17 : vector<2x14x14xf32>
    %c0_19 = arith.constant 0 : index
    %c2_20 = arith.constant 2 : index
    %c0_21 = arith.constant 0 : index
    %19 = vector.load %arg3[%c0_19, %c2_20, %c0_21] : memref<2x16x14xf32, #tpu.memory_space<vmem>>, vector<2x14x14xf32>
    %cst_22 = arith.constant 0.274068624 : f32
    %20 = vector.broadcast %cst_22 : f32 to vector<2x14x14xf32>
    %21 = arith.mulf %19, %20 : vector<2x14x14xf32>
    %22 = arith.addf %18, %21 : vector<2x14x14xf32>
    %c0_23 = arith.constant 0 : index
    %c0_24 = arith.constant 0 : index
    %c0_25 = arith.constant 0 : index
    %23 = vector.load %arg2[%c0_23, %c0_24, %c0_25] : memref<2x14x14xf32, #tpu.memory_space<vmem>>, vector<2x14x14xf32>
    tpu.vector_store %arg2[%c0_23, %c0_24, %c0_25], %22 {strides = array<i32>} : memref<2x14x14xf32, #tpu.memory_space<vmem>>, vector<2x14x14xf32>,
    return
  }
  func.func @transform_0(%arg0: i32) -> (i32, i32, i32) {
    %c0_i32 = arith.constant 0 : i32
    %c0_i32_0 = arith.constant 0 : i32
    %c0_i32_1 = arith.constant 0 : i32
    return %arg0, %c0_i32, %c0_i32_0 : i32, i32, i32
  }
  func.func @transform_1(%arg0: i32) -> (i32, i32, i32) {
    %c0_i32 = arith.constant 0 : i32
    %c0_i32_0 = arith.constant 0 : i32
    %c0_i32_1 = arith.constant 0 : i32
    return %arg0, %c0_i32, %c0_i32_0 : i32, i32, i32
  }
}

</mosaic_0001>

<bundles_post_ra>
// kernel: gaussian_smoothing.1
= control target key start
LH: loop header
LB: loop body
LE: loop exit
PB: predicated region body
PF: predicated region fallthrough
CT: control target
= control target key end

     0   :  { %6 = vsyncpa [#allocation4], 0  ;;  %s553_s0 = inlined_call_operand.hbm [shape: f32[8,16,16], index: 0, kind: input, shape index: {}]   ;;  %s554_s1 = inlined_call_operand.vmem [shape: f32[8,14,14], index: 1, kind: output, shape index: {}]  }
   0x1   :  { %8 = vsyncpa [#allocation4 + $0x1], 0  ;;  %s445_s6 = smov 0   ;;  %s447_s7 = smov 0  }
   0x2   :  { %s449_s8 = smov 0   ;;  %s451_s9 = smov 0  }
   0x3 LB: > { %s305_s10 = sadd.s32 4294967295, %s428_s9   ;;  %s465_s11 = sadd.s32 1, %s428_s9   ;;  %s428_s9 = sphi %s451_s9, %s563_s9   ;;  %s424_s8 = sphi %s449_s8, %s562_s8   ;;  %s420_s7 = sphi %s447_s7, %s561_s7   ;;  %s416_s6 = sphi %s445_s6, %s560_s6  }
   0x4   : > { %s18_s12 = ssub.s32 %s428_s9, %s465_s11  ;;  %s21_s13 = sadd.s32 1, %s424_s8 }
   0x5   : > { %p19_p0 = scmp.eq.s32.totalorder %s18_s12, 0  ;;  %p28_p1 = scmp.ne.s32.totalorder %s424_s8, %s420_s7 }
   0x6   : > { %p29_p2 = scmp.eq.s32.totalorder %s428_s9, 0  ;;  %p34_p3 = scmp.ne.s32.totalorder %s420_s7, %s416_s6 }
   0x7   : > { %s475_s14 = scalar_select %p19_p0, %s424_s8, %s21_s13  }
   0x8   : > { %p30_p4 = por %p29_p2, %p28_p1  ;;  %p35_p5 = scmp.eq.s32.totalorder %s305_s10, 0 }
   0x9   : > { %p329_p6 = scmp.lt.s32.totalorder %s428_s9, 4  ;;  %s84_s16 = sand.u32 1, %s424_s8  }
   0xa   : > { %p480_p7 = por %p35_p5, %p34_p3  ;;  %s309_s17 = sshll.u32 %s84_s16, 5 }
   0xb   : > { %s321_s18 = sshll.u32 %s428_s9, 9  ;;  %s88_s22 = scalar_lea.vmem [#allocation3], %s309_s17 }
   0xc   : > { %s556_s15 = scalar_select %p480_p7, 1, 0 }
   0xd   : > { %s489_s21 = scalar_lea.hbm %s553_s0, %s321_s18  ;;  %s96_s23 = sshll.u32 %s88_s22, 4  ;;  %s491_s23 = int_to_ptr.vmem [resolvable:$true] %s96_s23 }
   0xe   : > { %p493_p8 = pnand %p329_p6, %p30_p4  ;;  %s498_s25 = scalar_lea.sflag [#allocation4], %s84_s16 }
   0xf   : > { %s366_s26 = scalar_lea.hbm %s489_s21, 512  ;;  %s371_s29 = scalar_lea.hbm %s553_s0, 2048 }
  0x10   : > { %p367_p10 = scmp.ne.s32.totalorder %s489_s21, %s366_s26  ;;  %p368_p11 = pneg %p493_p8 }
  0x11   : > { %p372_p0 = scmp.lt.s32.totalorder %s489_s21, %s553_s0  ;;  %p373_p1 = scmp.lt.s32.totalorder %s371_s29, %s366_s26 }
  0x12   : > { %p369_p12 = pnand %p368_p11, %p367_p10 }
  0x13   : > { %p374_p2 = por %p373_p1, %p372_p0 }
  0x14   : > { %p370_p13 = pneg %p369_p12 }
  0x16   : > { %p375_p3 = pnand %p374_p2, %p370_p13 }
  0x18   : > { %378 = shalt.err (!%p375_p3)
}
  0x19   : > { %s379_s3 = scalar_lea.vmem %s491_s23, 512  ;;  %s430_s4 = smov [#allocation3]  }
  0x1a   : > { %p380_p4 = scmp.ne.s32.totalorder %s491_s23, %s379_s3  ;;  %s384_s5 = sshll.u32 %s430_s4, 4  ;;  %s385_s5 = int_to_ptr.vmem [resolvable:$false] %s384_s5 }
  0x1b   : > { %s386_s6 = scalar_lea.vmem %s385_s5, 1024  ;;  %p387_p10 = scmp.lt.s32.totalorder %s491_s23, %s385_s5 }
  0x1c   : > { %p382_p5 = pnand %p380_p4, %p368_p11  ;;  %p388_p12 = scmp.lt.s32.totalorder %s386_s6, %s379_s3 }
  0x1e   : > { %p383_p6 = pneg %p382_p5  ;;  %p389_p9 = por %p388_p12, %p387_p10 }
  0x20   : > { %p390_p7 = pnand %p389_p9, %p383_p6 }
  0x22   : > { %393 = shalt.err (!%p390_p7)
}
  0x23   : > { %s431_s12 = smov 128   ;;  %s432_s13 = smov 8  }
  0x24   : > { %328 = dma.hbm_to_vmem [thread:$0]  (!%p493_p8), %s489_s21, 512, %s491_s23, %s498_s25, %s431_s12, %s431_s12, %s432_s13  }
  0x25   : > { %p104_p11 = scmp.lt.s32.totalorder %s428_s9, 5  ;;  %p558_p13 = scmp.ge.s32.totalorder %s428_s9, 1 }
  0x27   : > { %p105_p0 = pnand %p558_p13, %p104_p11 }
  0x28   : > { %s110_s16 = sand.u32 (!%p105_p0), 1, %s420_s7   ;;  %p559_p7 = scmp.ne.s32.totalorder (!%p105_p0), %s556_s15, 0 }
  0x29   : > { %108 = sbr.rel (%p105_p0) target bundleno = 196 (0xc4), region = 24  ;;  %s314_s17 = sshll.u32 (!%p105_p0), %s110_s16, 5 }
  0x2a   : > { %s111_s18 = scalar_lea.sflag (!%p105_p0), [#allocation4], %s110_s16  ;;  %s114_s19 = scalar_lea.vmem (!%p105_p0), [#allocation3], %s314_s17 }
  0x2e   : > { %411 = dma.done.wait (%p559_p7), %s111_s18, 512  }
  0x2f   : > { %413 = vsyncadd (%p559_p7), %s111_s18, 4294966784  ;;  %v144_v0 = vld [vmem:[%s114_s19 + $0x10] sm:$0xff]  ;;  %v142_v1 = vld [vmem:[%s114_s19] sm:$0xff]  ;;  %s433_s20 = smov 127   ;;  %s434_s21 = smov 126   ;;  %vm194_vm0 = vcmask 113664  }
  0x30   : > { %v145_v2 = vld [vmem:[%s114_s19 + $0x18] sm:$0xff]  ;;  %v152_v3 = vmul.f32 0.45186275, %v144_v0  ;;  %v150_v4 = vmul.f32 0.45186275, %v142_v1  ;;  %v143_v5 = vld [vmem:[%s114_s19 + $0x8] sm:$0xff] }
  0x31   : > { %v153_v6 = vmul.f32 0.45186275, %v145_v2  ;;  %v151_v7 = vmul.f32 0.45186275, %v143_v5  ;;  %v146_v8 = vmul.f32 0.27406862, %v142_v1 }
  0x32   : > { %162 = vrot.lane.b32.xlu1 %v152_v3, %s433_s20  ;;  %158 = vrot.lane.b32.xlu0 %v150_v4, %s433_s20  ;;  %v147_v9 = vmul.f32 0.27406862, %v143_v5  ;;  %v148_v10 = vmul.f32 0.27406862, %v144_v0  ;;  %v149_v11 = vmul.f32 0.27406862, %v145_v2 }
  0x33   : > { %s315_s15 = sshll.u32 %s305_s10, 1  ;;  %vm232_vm1 = vcmask 111616  }
  0x34   : > { %p136_p8 = scmp.lt.s32.totalorder %s315_s15, 7 }
  0x36   : > { %164 = vrot.lane.b32.xlu1 %v153_v6, %s433_s20  ;;  %160 = vrot.lane.b32.xlu0 %v151_v7, %s433_s20  ;;  %s565_s15 = smov (!%p136_p8, %s315_s15), 7 }
  0x37   : > { %s322_s9 = sshll.u32 %s565_s15, 4 }
  0x38   : > { %s140_s23 = scalar_lea.vmem %s554_s1, %s322_s9 }
  0x3a   : > { %180 = vrot.lane.b32.xlu1 %v147_v9, %s434_s21  ;;  %178 = vrot.lane.b32.xlu0 %v146_v8, %s434_s21 }
  0x3e   : > { %184 = vrot.lane.b32.xlu1 %v149_v11, %s434_s21  ;;  %182 = vrot.lane.b32.xlu0 %v148_v10, %s434_s21 }
  0xa4   : > { %v163_v12 = vpop.permute.xlu1 %162  ;;  %v159_v13 = vpop.permute.xlu0 %158 }
  0xa5   : > { %v170_v16 = vadd.f32 %v159_v13, %v146_v8  ;;  %v172_v22 = vadd.f32 %v163_v12, %v148_v10 }
  0xa8   : > { %v165_v14 = vpop.permute.xlu1 %164  ;;  %v161_v15 = vpop.permute.xlu0 %160 }
  0xa9   : > { %v171_v17 = vadd.f32 %v161_v15, %v147_v9  ;;  %v173_v23 = vadd.f32 %v165_v14, %v149_v11 }
  0xac   : > { %v181_v18 = vpop.permute.xlu1 %180  ;;  %v179_v19 = vpop.permute.xlu0 %178 }
  0xad   : > { %v191_v20 = vadd.f32 %v181_v18, %v171_v17  ;;  %v190_v21 = vadd.f32 %v179_v19, %v170_v16 }
  0xaf   : > { %196 = vst.msk [vmem:[#allocation2 + $0x8] sm:$0xff] %vm194_vm0, %v191_v20  ;;  %195 = vst.msk [vmem:[#allocation2] sm:$0xff] %vm194_vm0, %v190_v21 }
  0xb0   : > { %v185_v24 = vpop.permute.xlu1 %184  ;;  %v183_v25 = vpop.permute.xlu0 %182 }
  0xb1   : > { %v193_v26 = vadd.f32 %v185_v24, %v173_v23  ;;  %v192_v27 = vadd.f32 %v183_v25, %v172_v22 }
  0xb3   : > { %198 = vst.msk [vmem:[#allocation2 + $0x18] sm:$0xff] %vm194_vm0, %v193_v26  ;;  %197 = vst.msk [vmem:[#allocation2 + $0x10] sm:$0xff] %vm194_vm0, %v192_v27 }
  0xb6   : > { %v200_v28 = vld [vmem:[#allocation2 + $0x8] sm:$0x3f]  ;;  %v199_v34 = vld [vmem:[#allocation2] sm:$0xff] }
  0xb7   : > { %v208_v29 = vld [vmem:[#allocation2 + $0x9] sm:$0x3f]  ;;  %v204_v31 = vmul.f32 0.27406862, %v200_v28  ;;  %v207_v35 = vld [vmem:[#allocation2 + $0x1] sm:$0xff] }
  0xb8   : > { %v220_v30 = vld [vmem:[#allocation2 + $0xa] sm:$0x3f]  ;;  %v212_v32 = vmul.f32 0.45186275, %v208_v29  ;;  %v219_v36 = vld [vmem:[#allocation2 + $0x2] sm:$0xff] }
  0xb9   : > { %v224_v33 = vmul.f32 0.27406862, %v220_v30  ;;  %v203_v38 = vmul.f32 0.27406862, %v199_v34  ;;  %v211_v39 = vmul.f32 0.45186275, %v207_v35 }
  0xba   : > { %v216_v37 = vadd.f32 %v212_v32, %v204_v31  ;;  %v223_v40 = vmul.f32 0.27406862, %v219_v36  ;;  %v202_v41 = vld [vmem:[#allocation2 + $0x18] sm:$0x3f]  ;;  %v201_v48 = vld [vmem:[#allocation2 + $0x10] sm:$0xff] }
  0xbb   : > { %v210_v42 = vld [vmem:[#allocation2 + $0x19] sm:$0x3f]  ;;  %v215_v45 = vadd.f32 %v211_v39, %v203_v38  ;;  %v206_v46 = vmul.f32 0.27406862, %v202_v41  ;;  %v209_v49 = vld [vmem:[#allocation2 + $0x11] sm:$0xff] }
  0xbc   : > { %v222_v43 = vld [vmem:[#allocation2 + $0x1a] sm:$0x3f]  ;;  %v228_v44 = vadd.f32 %v224_v33, %v216_v37  ;;  %v214_v47 = vmul.f32 0.45186275, %v210_v42  ;;  %v205_v50 = vmul.f32 0.27406862, %v201_v48 }
  0xbd   : > { %v213_v51 = vmul.f32 0.45186275, %v209_v49  ;;  %v227_v52 = vadd.f32 %v223_v40, %v215_v45  ;;  %v226_v54 = vmul.f32 0.27406862, %v222_v43  ;;  %v221_v55 = vld [vmem:[#allocation2 + $0x12] sm:$0xff] }
  0xbe   : > { %233 = vst.msk [vmem:[%s140_s23 + $0x8] sm:$0x3f] %vm232_vm1, %v228_v44  ;;  %v218_v53 = vadd.f32 %v214_v47, %v206_v46  ;;  %v225_v57 = vmul.f32 0.27406862, %v221_v55 }
  0xbf   : > { %v217_v56 = vadd.f32 %v213_v51, %v205_v50  ;;  %231 = vst.msk [vmem:[%s140_s23] sm:$0xff] %vm194_vm0, %v227_v52 }
  0xc0   : > { %v230_v58 = vadd.f32 %v226_v54, %v218_v53 }
  0xc1   : > { %v229_v59 = vadd.f32 %v225_v57, %v217_v56 }
  0xc2   : > { %235 = vst.msk [vmem:[%s140_s23 + $0x18] sm:$0x3f] %vm232_vm1, %v230_v58 }
  0xc3   : > { %234 = vst.msk [vmem:[%s140_s23 + $0x10] sm:$0xff] %vm194_vm0, %v229_v59 }
  0xc4 PF: > { %p11_p9 = scmp.ge.s32.totalorder %s465_s11, 6   ;;  %s560_s6 = smov %s420_s7 }
  0xc5   : > { %s561_s7 = smov %s424_s8  ;;  %s562_s8 = smov %s475_s14 }
  0xc6   : > { %s563_s9 = smov %s465_s11  ;;  %13 = sbr.rel (!%p11_p9) target bundleno = 3 (0x3), region = 64 }
  0xcb   :  { %260 = vsyncpa [#allocation4], 1 }
  0xcc   :  { %262 = vsyncpa [#allocation4 + $0x1], 1 }

</bundles_post_ra>
